<compile_context>
chip_gen: v7x
topology: tpu7x:2x2x1
jax: 0.10.0
libtpu: 0.0.40
codegen_flags: <defaults>
</compile_context>

<pallas_src>
import functools

import jax
import jax.numpy as jnp
from jax import lax
from jax.experimental import pallas as pl
from jax.experimental.pallas import tpu as pltpu

# ---- module hyper-parameters (consistent with the torch module) ----
N_LAGS = 7                  # (n_lags + 1) % 2 == 0  ->  n_lags odd
N_HIDDEN = 32
N_LAYERS = 2
SEQ = 128
BATCH = 4


def hammerstein_kernel(x_ref, w1_ref, b1_ref, wh_ref, bh_ref, wj_ref, coef_ref,
                       y_ref, *, sig_len, n_lags):
    """All refs are full arrays (no grid).  coef_ref is 1-D SMEM: [fir taps..., bj]."""
    pad = n_lags // 2
    total = y_ref.shape[-1]                  # B * sig_len  (signals packed on lanes)

    x_row = x_ref[...]                       # (1, total): time on lanes

    # ---- linear_explode folded into hidden layer 0 (host-side algebra) ----
    #   z[h, t] = relu(w1[h] * x[t] + b1[h])
    z = jnp.maximum(w1_ref[...] * x_row + b1_ref[...], 0.0)              # (H, total)

    # ---- remaining hidden layers: (H,H) @ (H,total) MXU matmuls, lane-dense ----
    # NOTE: default MXU precision (f32 operands, f32 accumulate); the fold above
    # also changes summation order vs torch -> tolerance-level differences only.
    for l in range(wh_ref.shape[0]):
        z = jnp.dot(wh_ref[l], z, preferred_element_type=jnp.float32) + bh_ref[l]
        z = jnp.maximum(z, 0.0)

    # ---- linear_join emitted directly as a lane-dense (1, total) row ----
    z2 = jnp.dot(wj_ref[...], z, preferred_element_type=jnp.float32) + coef_ref[n_lags]

    # ---- FIR (cross-correlation over zero-padded signal), fully in-register ----
    #   y[t] = sum_k fir[k] * z2[t + k - pad]   (z2 zero outside each signal)
    # Signals are concatenated on the lane axis, so the validity mask is built from
    # the position-within-signal (lane % sig_len), not the global lane index.
    lane = lax.broadcasted_iota(jnp.int32, (1, total), 1)
    if sig_len & (sig_len - 1) == 0:
        pos = lane & (sig_len - 1)           # cheap bitwise AND for pow2 lengths
    else:
        pos = lane % sig_len

    y = coef_ref[pad] * z2                   # center tap
    for k in range(n_lags):
        s = k - pad
        if s == 0:
            continue
        rolled = pltpu.roll(z2, shift=(-s) % total, axis=1)   # rolled[t] = z2[(t+s) % total]
        valid = (pos < sig_len - s) if s > 0 else (pos >= -s)  # per-signal zero padding
        y = y + coef_ref[k] * jnp.where(valid, rolled, 0.0)

    y_ref[...] = y


def hammerstein_forward(x, params):
    """x: (N,) or (B, N) float32.  Returns the same leading shape, length N."""
    fir, We, be, Wh, bh, Wj, bj = params
    single = x.ndim == 1
    if single:
        x = x[None, :]
    B, N = x.shape
    H = We.shape[0]
    L = Wh.shape[0]
    n_lags = fir.shape[0]
    assert n_lags % 2 == 1
    assert L >= 2, "kernel assumes >=2 hidden layers (layer 0 is folded away)"

    f32 = jnp.float32
    hp = lax.Precision.HIGHEST

    # Fold linear_explode (Linear(1,H), no activation) into hidden layer 0.
    w1 = jnp.dot(Wh[0], We[:, 0], precision=hp).reshape(H, 1).astype(f32)
    b1 = (jnp.dot(Wh[0], be, precision=hp) + bh[0]).reshape(H, 1).astype(f32)
    wh_rest = Wh[1:].astype(f32)                          # (L-1, H, H), torch (out, in) layout
    bh_rest = bh[1:].reshape(L - 1, H, 1).astype(f32)
    wj_row = Wj.reshape(1, H).astype(f32)
    coef = jnp.concatenate([fir, bj]).astype(f32)         # (n_lags+1,) -> SMEM scalars

    # Pack ALL signals on the lane axis: one grid step, 1 wide lane-dense store.
    x2 = x.reshape(1, B * N).astype(f32)

    vmem = pl.BlockSpec(memory_space=pltpu.MemorySpace.VMEM)
    smem = pl.BlockSpec(memory_space=pltpu.MemorySpace.SMEM)

    kernel = functools.partial(hammerstein_kernel, sig_len=N, n_lags=n_lags)

    y = pl.pallas_call(
        kernel,
        out_shape=jax.ShapeDtypeStruct((1, B * N), f32),
        in_specs=[vmem, vmem, vmem, vmem, vmem, vmem, smem],
        out_specs=vmem,
    )(x2, w1, b1, wh_rest, bh_rest, wj_row, coef)

    y = y.reshape(B, N)
    return y[0] if single else y


def init_params(key):
    k1, k2, k3, k4, k5, k6 = jax.random.split(key, 6)
    # FIR filter: delta at the center tap (exactly like the torch __init__)
    fir = jnp.zeros((N_LAGS,), jnp.float32).at[N_LAGS // 2].set(1.0)
    # torch Linear default init: U(-1/sqrt(fan_in), +1/sqrt(fan_in))
    We = jax.random.uniform(k1, (N_HIDDEN, 1), jnp.float32, -1.0, 1.0)     # fan_in = 1
    be = jax.random.uniform(k2, (N_HIDDEN,), jnp.float32, -1.0, 1.0)
    bound = 1.0 / float(N_HIDDEN) ** 0.5
    Wh = jax.random.uniform(k3, (N_LAYERS, N_HIDDEN, N_HIDDEN), jnp.float32, -bound, bound)
    bh = jax.random.uniform(k4, (N_LAYERS, N_HIDDEN), jnp.float32, -bound, bound)
    Wj = jax.random.uniform(k5, (1, N_HIDDEN), jnp.float32, -bound, bound)
    bj = jax.random.uniform(k6, (1,), jnp.float32, -bound, bound)
    return fir, We, be, Wh, bh, Wj, bj


def ref_forward(x, params):
    """Pure-JAX transcription of HammersteinNN.forward (torch semantics), one signal."""
    fir, We, be, Wh, bh, Wj, bj = params
    hp = lax.Precision.HIGHEST
    z = x[:, None] * We[:, 0][None, :] + be[None, :]                     # Linear(1, H)
    for l in range(Wh.shape[0]):
        z = jnp.maximum(jnp.dot(z, Wh[l].T, precision=hp) + bh[l], 0.0)  # Linear(H,H)+ReLU
    z2 = jnp.dot(z, Wj.T, precision=hp)[:, 0] + bj[0]                    # Linear(H, 1)
    pad = fir.shape[0] // 2
    z2pad = jnp.concatenate(
        [jnp.zeros((pad,), z2.dtype), z2, jnp.zeros((pad,), z2.dtype)])
    y = jnp.zeros_like(x)
    for k in range(fir.shape[0]):                                        # conv1d == cross-corr
        y = y + fir[k] * z2pad[k:k + x.shape[0]]
    return y


if __name__ == "__main__":
    key = jax.random.PRNGKey(0)
    kx, kp, kf = jax.random.split(key, 3)
    x = jax.random.normal(kx, (BATCH, SEQ), jnp.float32)
    params = init_params(kp)

    tol = dict(rtol=1e-3, atol=1e-3)   # kernel dots use default MXU precision

    # 1) delta-FIR (torch default init), batched (signals packed on the lane axis)
    y = jax.block_until_ready(hammerstein_forward(x, params))
    y_ref = jax.vmap(lambda xi: ref_forward(xi, params))(x)
    assert y.shape == (BATCH, SEQ)
    assert jnp.allclose(y, y_ref, **tol), (
        f"max abs err {jnp.max(jnp.abs(y - y_ref))}")

    # 2) random asymmetric FIR taps: exercises tap ordering and the per-signal
    #    zero-padded edge masks at every packed-signal boundary
    fir_rand = jax.random.normal(kf, (N_LAGS,), jnp.float32)
    params_rand = (fir_rand,) + params[1:]
    y2 = jax.block_until_ready(hammerstein_forward(x, params_rand))
    y2_ref = jax.vmap(lambda xi: ref_forward(xi, params_rand))(x)
    assert jnp.allclose(y2, y2_ref, **tol), (
        f"max abs err {jnp.max(jnp.abs(y2 - y2_ref))}")

    # 3) single 1-D signal (the exact torch forward signature)
    y3 = jax.block_until_ready(hammerstein_forward(x[0], params_rand))
    y3_ref = ref_forward(x[0], params_rand)
    assert y3.shape == (SEQ,)
    assert jnp.allclose(y3, y3_ref, **tol), (
        f"max abs err {jnp.max(jnp.abs(y3 - y3_ref))}")

    print("KERNEL_OK")
</pallas_src>

<mosaic_0001>
module attributes {stable_mosaic.version = 11 : i64} {
  func.func @hammerstein_kernel(%arg0: memref<1x512xf32, #tpu.memory_space<vmem>>, %arg1: memref<32x1xf32, #tpu.memory_space<vmem>>, %arg2: memref<32x1xf32, #tpu.memory_space<vmem>>, %arg3: memref<1x32x32xf32, #tpu.memory_space<vmem>>, %arg4: memref<1x32x1xf32, #tpu.memory_space<vmem>>, %arg5: memref<1x32xf32, #tpu.memory_space<vmem>>, %arg6: memref<8xf32, #tpu.memory_space<smem>>, %arg7: memref<1x512xf32, #tpu.memory_space<vmem>>) attributes {dimension_semantics = [], scalar_prefetch = 0 : i64, scratch_operands = 0 : i64, tpu.core_type = #tpu.core_type<tc>} {
    %c0 = arith.constant 0 : index
    %c0_0 = arith.constant 0 : index
    %0 = vector.load %arg0[%c0, %c0_0] : memref<1x512xf32, #tpu.memory_space<vmem>>, vector<1x512xf32>
    %c0_1 = arith.constant 0 : index
    %c0_2 = arith.constant 0 : index
    %1 = vector.load %arg1[%c0_1, %c0_2] : memref<32x1xf32, #tpu.memory_space<vmem>>, vector<32x1xf32>
    %2 = vector.broadcast %1 : vector<32x1xf32> to vector<32x512xf32>
    %3 = vector.broadcast %0 : vector<1x512xf32> to vector<32x512xf32>
    %4 = arith.mulf %2, %3 : vector<32x512xf32>
    %c0_3 = arith.constant 0 : index
    %c0_4 = arith.constant 0 : index
    %5 = vector.load %arg2[%c0_3, %c0_4] : memref<32x1xf32, #tpu.memory_space<vmem>>, vector<32x1xf32>
    %6 = vector.broadcast %5 : vector<32x1xf32> to vector<32x512xf32>
    %7 = arith.addf %4, %6 : vector<32x512xf32>
    %cst = arith.constant 0.000000e+00 : f32
    %8 = vector.broadcast %cst : f32 to vector<32x512xf32>
    %9 = arith.maximumf %7, %8 : vector<32x512xf32>
    %c0_5 = arith.constant 0 : index
    %c0_6 = arith.constant 0 : index
    %c0_7 = arith.constant 0 : index
    %10 = vector.load %arg3[%c0_5, %c0_6, %c0_7] : memref<1x32x32xf32, #tpu.memory_space<vmem>>, vector<1x32x32xf32>
    %11 = vector.shape_cast %10 : vector<1x32x32xf32> to vector<32x32xf32>
    %cst_8 = arith.constant dense<0.000000e+00> : vector<32x512xf32>
    %12 = tpu.matmul %11, %9, %cst_8 {dimension_numbers = #tpu.dot_dimension_numbers<[1], [0], [0], [1], [0, 0, 1, 1], [], []>} : vector<32x32xf32>, vector<32x512xf32>, vector<32x512xf32> -> vector<32x512xf32>
    %c0_9 = arith.constant 0 : index
    %c0_10 = arith.constant 0 : index
    %c0_11 = arith.constant 0 : index
    %13 = vector.load %arg4[%c0_9, %c0_10, %c0_11] : memref<1x32x1xf32, #tpu.memory_space<vmem>>, vector<1x32x1xf32>
    %14 = vector.shape_cast %13 : vector<1x32x1xf32> to vector<32x1xf32>
    %15 = vector.broadcast %14 : vector<32x1xf32> to vector<32x512xf32>
    %16 = arith.addf %12, %15 : vector<32x512xf32>
    %cst_12 = arith.constant 0.000000e+00 : f32
    %17 = vector.broadcast %cst_12 : f32 to vector<32x512xf32>
    %18 = arith.maximumf %16, %17 : vector<32x512xf32>
    %c0_13 = arith.constant 0 : index
    %c0_14 = arith.constant 0 : index
    %19 = vector.load %arg5[%c0_13, %c0_14] : memref<1x32xf32, #tpu.memory_space<vmem>>, vector<1x32xf32>
    %cst_15 = arith.constant dense<0.000000e+00> : vector<1x512xf32>
    %20 = tpu.matmul %19, %18, %cst_15 {dimension_numbers = #tpu.dot_dimension_numbers<[1], [0], [0], [1], [0, 0, 1, 1], [], []>} : vector<1x32xf32>, vector<32x512xf32>, vector<1x512xf32> -> vector<1x512xf32>
    %c7 = arith.constant 7 : index
    %21 = memref.load %arg6[%c7] : memref<8xf32, #tpu.memory_space<smem>>
    %22 = vector.broadcast %21 : f32 to vector<1x512xf32>
    %23 = arith.addf %20, %22 : vector<1x512xf32>
    %24 = tpu.iota {dimensions = array<i32: 1>} : vector<1x512xi32>
    %c127_i32 = arith.constant 127 : i32
    %25 = vector.broadcast %c127_i32 : i32 to vector<1x512xi32>
    %26 = arith.andi %24, %25 : vector<1x512xi32>
    %c3 = arith.constant 3 : index
    %27 = memref.load %arg6[%c3] : memref<8xf32, #tpu.memory_space<smem>>
    %28 = vector.broadcast %27 : f32 to vector<1x512xf32>
    %29 = arith.mulf %28, %23 : vector<1x512xf32>
    %c3_i32 = arith.constant 3 : i32
    %30 = tpu.dynamic_rotate %23 by %c3_i32 dim 1 : vector<1x512xf32>, i32 -> vector<1x512xf32>
    %c3_i32_16 = arith.constant 3 : i32
    %31 = vector.broadcast %c3_i32_16 : i32 to vector<1x512xi32>
    %32 = arith.cmpi sge, %26, %31 : vector<1x512xi32>
    %c0_17 = arith.constant 0 : index
    %33 = memref.load %arg6[%c0_17] : memref<8xf32, #tpu.memory_space<smem>>
    %cst_18 = arith.constant 0.000000e+00 : f32
    %34 = vector.broadcast %cst_18 : f32 to vector<1x512xf32>
    %35 = arith.select %32, %30, %34 : vector<1x512xi1>, vector<1x512xf32>
    %36 = vector.broadcast %33 : f32 to vector<1x512xf32>
    %37 = arith.mulf %36, %35 : vector<1x512xf32>
    %38 = arith.addf %29, %37 : vector<1x512xf32>
    %c2_i32 = arith.constant 2 : i32
    %39 = tpu.dynamic_rotate %23 by %c2_i32 dim 1 : vector<1x512xf32>, i32 -> vector<1x512xf32>
    %c2_i32_19 = arith.constant 2 : i32
    %40 = vector.broadcast %c2_i32_19 : i32 to vector<1x512xi32>
    %41 = arith.cmpi sge, %26, %40 : vector<1x512xi32>
    %c1 = arith.constant 1 : index
    %42 = memref.load %arg6[%c1] : memref<8xf32, #tpu.memory_space<smem>>
    %cst_20 = arith.constant 0.000000e+00 : f32
    %43 = vector.broadcast %cst_20 : f32 to vector<1x512xf32>
    %44 = arith.select %41, %39, %43 : vector<1x512xi1>, vector<1x512xf32>
    %45 = vector.broadcast %42 : f32 to vector<1x512xf32>
    %46 = arith.mulf %45, %44 : vector<1x512xf32>
    %47 = arith.addf %38, %46 : vector<1x512xf32>
    %c1_i32 = arith.constant 1 : i32
    %48 = tpu.dynamic_rotate %23 by %c1_i32 dim 1 : vector<1x512xf32>, i32 -> vector<1x512xf32>
    %c1_i32_21 = arith.constant 1 : i32
    %49 = vector.broadcast %c1_i32_21 : i32 to vector<1x512xi32>
    %50 = arith.cmpi sge, %26, %49 : vector<1x512xi32>
    %c2 = arith.constant 2 : index
    %51 = memref.load %arg6[%c2] : memref<8xf32, #tpu.memory_space<smem>>
    %cst_22 = arith.constant 0.000000e+00 : f32
    %52 = vector.broadcast %cst_22 : f32 to vector<1x512xf32>
    %53 = arith.select %50, %48, %52 : vector<1x512xi1>, vector<1x512xf32>
    %54 = vector.broadcast %51 : f32 to vector<1x512xf32>
    %55 = arith.mulf %54, %53 : vector<1x512xf32>
    %56 = arith.addf %47, %55 : vector<1x512xf32>
    %c511_i32 = arith.constant 511 : i32
    %57 = tpu.dynamic_rotate %23 by %c511_i32 dim 1 : vector<1x512xf32>, i32 -> vector<1x512xf32>
    %c127_i32_23 = arith.constant 127 : i32
    %58 = vector.broadcast %c127_i32_23 : i32 to vector<1x512xi32>
    %59 = arith.cmpi slt, %26, %58 : vector<1x512xi32>
    %c4 = arith.constant 4 : index
    %60 = memref.load %arg6[%c4] : memref<8xf32, #tpu.memory_space<smem>>
    %cst_24 = arith.constant 0.000000e+00 : f32
    %61 = vector.broadcast %cst_24 : f32 to vector<1x512xf32>
    %62 = arith.select %59, %57, %61 : vector<1x512xi1>, vector<1x512xf32>
    %63 = vector.broadcast %60 : f32 to vector<1x512xf32>
    %64 = arith.mulf %63, %62 : vector<1x512xf32>
    %65 = arith.addf %56, %64 : vector<1x512xf32>
    %c510_i32 = arith.constant 510 : i32
    %66 = tpu.dynamic_rotate %23 by %c510_i32 dim 1 : vector<1x512xf32>, i32 -> vector<1x512xf32>
    %c126_i32 = arith.constant 126 : i32
    %67 = vector.broadcast %c126_i32 : i32 to vector<1x512xi32>
    %68 = arith.cmpi slt, %26, %67 : vector<1x512xi32>
    %c5 = arith.constant 5 : index
    %69 = memref.load %arg6[%c5] : memref<8xf32, #tpu.memory_space<smem>>
    %cst_25 = arith.constant 0.000000e+00 : f32
    %70 = vector.broadcast %cst_25 : f32 to vector<1x512xf32>
    %71 = arith.select %68, %66, %70 : vector<1x512xi1>, vector<1x512xf32>
    %72 = vector.broadcast %69 : f32 to vector<1x512xf32>
    %73 = arith.mulf %72, %71 : vector<1x512xf32>
    %74 = arith.addf %65, %73 : vector<1x512xf32>
    %c509_i32 = arith.constant 509 : i32
    %75 = tpu.dynamic_rotate %23 by %c509_i32 dim 1 : vector<1x512xf32>, i32 -> vector<1x512xf32>
    %c125_i32 = arith.constant 125 : i32
    %76 = vector.broadcast %c125_i32 : i32 to vector<1x512xi32>
    %77 = arith.cmpi slt, %26, %76 : vector<1x512xi32>
    %c6 = arith.constant 6 : index
    %78 = memref.load %arg6[%c6] : memref<8xf32, #tpu.memory_space<smem>>
    %cst_26 = arith.constant 0.000000e+00 : f32
    %79 = vector.broadcast %cst_26 : f32 to vector<1x512xf32>
    %80 = arith.select %77, %75, %79 : vector<1x512xi1>, vector<1x512xf32>
    %81 = vector.broadcast %78 : f32 to vector<1x512xf32>
    %82 = arith.mulf %81, %80 : vector<1x512xf32>
    %83 = arith.addf %74, %82 : vector<1x512xf32>
    %c0_27 = arith.constant 0 : index
    %c0_28 = arith.constant 0 : index
    %84 = vector.load %arg7[%c0_27, %c0_28] : memref<1x512xf32, #tpu.memory_space<vmem>>, vector<1x512xf32>
    tpu.vector_store %arg7[%c0_27, %c0_28], %83 {strides = array<i32>} : memref<1x512xf32, #tpu.memory_space<vmem>>, vector<1x512xf32>,
    return
  }
}

</mosaic_0001>

<bundles_post_ra>
// kernel: tpu_custom_call.1
= control target key start
LH: loop header
LB: loop body
LE: loop exit
PB: predicated region body
PF: predicated region fallthrough
CT: control target
= control target key end

     0   :  { %12 = vsyncpa [#allocation4], 0  ;;  %s1273_s0 = inlined_call_operand.vmem [shape: f32[1,512], index: 0, kind: input, shape index: {}]   ;;  %s1274_s1 = inlined_call_operand.vmem [shape: f32[32,1], index: 1, kind: input, shape index: {}]   ;;  %s1275_s2 = inlined_call_operand.vmem [shape: f32[32,1], index: 2, kind: input, shape index: {}]   ;;  %s1276_s3 = inlined_call_operand.vmem [shape: f32[1,32,32], index: 3, kind: input, shape index: {}]   ;;  %s1277_s4 = inlined_call_operand.vmem [shape: f32[1,32,1], index: 4, kind: input, shape index: {}]   ;;  %s1278_s5 = inlined_call_operand.vmem [shape: f32[1,32], index: 5, kind: input, shape index: {}]   ;;  %s1279_s6 = inlined_call_operand.vmem [shape: f32[8], index: 6, kind: input, shape index: {}]   ;;  %s1280_s7 = inlined_call_operand.hbm [shape: f32[1,512], index: 7, kind: output, shape index: {}]  }
   0x1   :  { %13 = vsyncpa [#allocation3], 0  ;;  %s32_s26 = sshll.u32 %s1279_s6, 4  ;;  %s33_s26 = int_to_ptr.vmem [resolvable:$true] %s32_s26 }
   0x2   :  { %s853_s27 = scalar_lea.vmem %s33_s26, 16  ;;  %p858_p1 = scmp.lt.s32.totalorder %s33_s26, %s33_s26 }
   0x3   :  { %p854_p0 = scmp.ne.s32.totalorder %s33_s26, %s853_s27  ;;  %p859_p2 = scmp.lt.s32.totalorder %s853_s27, %s853_s27 }
   0x5   :  { %p860_p3 = por %p859_p2, %p858_p1 }
   0x7   :  { %p861_p4 = pnand %p860_p3, %p854_p0 }
   0x9   :  { %864 = shalt.err (!%p861_p4)
}
   0xa   :  { %s891_s28 = smov [#allocation2]  }
   0xb   :  { %35 = dma.vmem_to_smem %s33_s26, 16, %s891_s28, [#allocation4]  }
   0xc   :  { %887 = dma.done.wait [#allocation4], 16  }
   0xd   :  { %888 = vsyncadd [#allocation4], 4294967280 }
   0xe   :  { %39 = sfence }
   0xf   :  { %v102_v0 = vld [vmem:[%s1275_s2] sm:$0xff]  ;;  %v892_v2 = vmov 0   ;;  %v103_v3 = vld [vmem:[%s1275_s2 + $0x8] sm:$0xff]  ;;  %v44_v5 = vld [vmem:[%s1274_s1 + $0x18] sm:$0xff]  ;;  %v893_v13 = vmov 0.0   ;;  %v66_v14 = vlaneseq  ;;  %vm186_vm0 = vcmask 261120  }
  0x10   :  { %v41_v1 = vld [vmem:[%s1274_s1] sm:$0xff]  ;;  %852 = vset.pattern.permute.xlu1 %v892_v2  ;;  %851 = vset.pattern.permute.xlu0 %v892_v2  ;;  %v42_v4 = vld [vmem:[%s1274_s1 + $0x8] sm:$0xff]  ;;  %v43_v6 = vld [vmem:[%s1274_s1 + $0x10] sm:$0xff]  ;;  %s799_s12 = sld [smem:[#allocation2 + $0x7]]  ;;  %s894_s13 = smov 3  }
  0x11   :  { %108 = vperm.xlu1 %852, %v102_v0   ;;  %47 = vperm.xlu0 %851, %v41_v1   ;;  %v105_v7 = vld [vmem:[%s1275_s2 + $0x18] sm:$0xff]  ;;  %v104_v8 = vld [vmem:[%s1275_s2 + $0x10] sm:$0xff]  ;;  %v163_v9 = vld [vmem:[%s1277_s4 + $0x8] sm:$0xff]  ;;  %v984_v15 = vshrl.u32 %v66_v14, 7  ;;  %s896_s14 = smov 1   ;;  %s897_s15 = smov 127  }
  0x12   :  { %v162_v10 = vld [vmem:[%s1277_s4] sm:$0xff]  ;;  %v165_v11 = vld [vmem:[%s1277_s4 + $0x18] sm:$0xff]  ;;  %v164_v12 = vld [vmem:[%s1277_s4 + $0x10] sm:$0xff]  ;;  %263 = vmatprep.mubr.f32.mxu0 %v893_v13  ;;  %352 = vmatprep.mubr.f32.mxu1 %v893_v13  ;;  %s898_s16 = smov 126   ;;  %s899_s17 = smov 125  }
  0x13   :  { %v68_v16 = vsub.s32 0, %v984_v15  ;;  %v76_v17 = vsub.s32 2, %v984_v15  ;;  %v72_v18 = vsub.s32 1, %v984_v15  ;;  %v80_v19 = vsub.s32 3, %v984_v15  ;;  %v40_v20 = vld [vmem:[%s1273_s0] sm:$0xf] }
  0x14   :  { %s802_s18 = sld [smem:[#allocation2 + $0x3]]  ;;  %s573_s19 = sld [smem:[#allocation2]] }
  0x15   :  { %113 = vperm.xlu1 %852, %v103_v3   ;;  %52 = vperm.xlu0 %851, %v42_v4   ;;  %v69_v21 = vrot.slane %v40_v20, %v68_v16  ;;  %v77_v22 = vrot.slane %v40_v20, %v76_v17  ;;  %v73_v23 = vrot.slane %v40_v20, %v72_v18  ;;  %s803_s20 = sld [smem:[#allocation2 + $0x1]]  ;;  %s1070_s21 = sld [smem:[#allocation2 + $0x2]] }
  0x16   :  { %v81_v24 = vrot.slane %v40_v20, %v80_v19  ;;  %s1077_s22 = sld [smem:[#allocation2 + $0x4]]  ;;  %s1095_s23 = sld [smem:[#allocation2 + $0x5]] }
  0x17   :  { %s1103_s24 = sld [smem:[#allocation2 + $0x6]]  ;;  %s901_s1 = smov [#allocation5]  }
  0x18   :  { %s782_s25 = sshll.u32 %s901_s1, 4  ;;  %s783_s25 = int_to_ptr.vmem [resolvable:$true] %s782_s25 }
  0x19   :  { %62 = vperm.xlu1 %852, %v44_v5   ;;  %57 = vperm.xlu0 %851, %v43_v6   ;;  %s865_s26 = scalar_lea.vmem %s783_s25, 64  ;;  %p870_p6 = scmp.lt.s32.totalorder %s783_s25, %s783_s25 }
  0x1a   :  { %p866_p5 = scmp.ne.s32.totalorder %s783_s25, %s865_s26  ;;  %p871_p7 = scmp.lt.s32.totalorder %s865_s26, %s865_s26 }
  0x1c   :  { %p872_p8 = por %p871_p7, %p870_p6 }
  0x1d   :  { %123 = vperm.xlu1 %852, %v105_v7   ;;  %118 = vperm.xlu0 %851, %v104_v8  }
  0x1e   :  { %p873_p9 = pnand %p872_p8, %p866_p5 }
  0x21   :  { %173 = vperm.xlu1 %852, %v163_v9   ;;  %168 = vperm.xlu0 %851, %v162_v10  }
  0x25   :  { %183 = vperm.xlu1 %852, %v165_v11   ;;  %178 = vperm.xlu0 %851, %v164_v12  }
  0x90   :  { %v109_v25 = vpop.permute.xlu1 %108  ;;  %v48_v26 = vpop.permute.xlu0 %47 }
  0x91   :  { %v86_v27 = vmul.f32 %v69_v21, %v48_v26  ;;  %v88_v28 = vmul.f32 %v77_v22, %v48_v26  ;;  %v87_v29 = vmul.f32 %v73_v23, %v48_v26  ;;  %v89_v30 = vmul.f32 %v81_v24, %v48_v26 }
  0x93   :  { %v127_v33 = vadd.f32 %v109_v25, %v87_v29  ;;  %v129_v34 = vadd.f32 %v109_v25, %v89_v30  ;;  %v126_v35 = vadd.f32 %v109_v25, %v86_v27  ;;  %v128_v39 = vadd.f32 %v109_v25, %v88_v28  ;;  %v158_v28 = vld [vmem:[%s1276_s3] sm:$0xff]  ;;  %v159_v29 = vld [vmem:[%s1276_s3 + $0x8] sm:$0xff]  ;;  %v160_v30 = vld [vmem:[%s1276_s3 + $0x10] sm:$0xff] }
  0x94   :  { %v114_v31 = vpop.permute.xlu1 %113  ;;  %v53_v32 = vpop.permute.xlu0 %52 }
  0x95   :  { %v90_v36 = vmul.f32 %v69_v21, %v53_v32  ;;  %v92_v37 = vmul.f32 %v77_v22, %v53_v32  ;;  %v91_v38 = vmul.f32 %v73_v23, %v53_v32  ;;  %v93_v40 = vmul.f32 %v81_v24, %v53_v32 }
  0x96   :  { %v143_v47 = vmax.f32 %v127_v33, 0.0  ;;  %v145_v48 = vmax.f32 %v129_v34, 0.0  ;;  %v142_v49 = vmax.f32 %v126_v35, 0.0  ;;  %v144_v50 = vmax.f32 %v128_v39, 0.0 }
  0x97   :  { %v131_v41 = vadd.f32 %v114_v31, %v91_v38  ;;  %v130_v42 = vadd.f32 %v114_v31, %v90_v36  ;;  %v132_v43 = vadd.f32 %v114_v31, %v92_v37  ;;  %v133_v46 = vadd.f32 %v114_v31, %v93_v40  ;;  %v161_v31 = vld [vmem:[%s1276_s3 + $0x18] sm:$0xff] }
  0x98   :  { %v63_v44 = vpop.permute.xlu1 %62  ;;  %v58_v45 = vpop.permute.xlu0 %57 }
  0x99   :  { %v98_v51 = vmul.f32 %v69_v21, %v63_v44  ;;  %v99_v52 = vmul.f32 %v73_v23, %v63_v44  ;;  %v100_v53 = vmul.f32 %v77_v22, %v63_v44  ;;  %v101_v54 = vmul.f32 %v81_v24, %v63_v44 }
  0x9a   :  { %v147_v55 = vmax.f32 %v131_v41, 0.0  ;;  %v149_v56 = vmax.f32 %v133_v46, 0.0  ;;  %v146_v57 = vmax.f32 %v130_v42, 0.0  ;;  %v148_v58 = vmax.f32 %v132_v43, 0.0 }
  0x9b   :  { %v94_v59 = vmul.f32 %v69_v21, %v58_v45  ;;  %v95_v60 = vmul.f32 %v73_v23, %v58_v45  ;;  %v96_v61 = vmul.f32 %v77_v22, %v58_v45  ;;  %v97_v62 = vmul.f32 %v81_v24, %v58_v45 }
  0x9c   :  { %v124_v63 = vpop.permute.xlu1 %123  ;;  %v119_v0 = vpop.permute.xlu0 %118  ;;  %v808_v9 = vpack.c.bf16 %v147_v55, %v143_v47  ;;  %v816_v10 = vpack.c.bf16 %v149_v56, %v145_v48  ;;  %v810_v11 = vpack.c.bf16 %v146_v57, %v142_v49  ;;  %v818_v12 = vpack.c.bf16 %v148_v58, %v144_v50 }
  0x9d   :  { %v138_v1 = vadd.f32 %v124_v63, %v98_v51  ;;  %v139_v2 = vadd.f32 %v124_v63, %v99_v52  ;;  %v140_v3 = vadd.f32 %v124_v63, %v100_v53  ;;  %v141_v4 = vadd.f32 %v124_v63, %v101_v54 }
  0x9e   :  { %v134_v5 = vadd.f32 %v119_v0, %v94_v59  ;;  %v135_v6 = vadd.f32 %v119_v0, %v95_v60  ;;  %v136_v7 = vadd.f32 %v119_v0, %v96_v61  ;;  %v137_v8 = vadd.f32 %v119_v0, %v97_v62  ;;  %809 = vmatprep.subr.bf16.mxu0 %v808_v9 }
  0x9f   :  { %v155_v17 = vmax.f32 %v139_v2, 0.0  ;;  %v157_v19 = vmax.f32 %v141_v4, 0.0  ;;  %817 = vmatprep.subr.bf16.mxu1 %v816_v10  ;;  %v154_v21 = vmax.f32 %v138_v1, 0.0  ;;  %v156_v23 = vmax.f32 %v140_v3, 0.0  ;;  %811 = vmatpush1.bf16.msra.mxu0 %v810_v11 }
  0xa0   :  { %v151_v16 = vmax.f32 %v135_v6, 0.0  ;;  %v153_v18 = vmax.f32 %v137_v8, 0.0  ;;  %v150_v20 = vmax.f32 %v134_v5, 0.0  ;;  %v152_v22 = vmax.f32 %v136_v7, 0.0  ;;  %819 = vmatpush1.bf16.msra.mxu1 %v818_v12  ;;  %v169_v36 = vpop.permute.xlu0 %168  ;;  %v174_v37 = vpop.permute.xlu1 %173 }
  0xa2   :  { %v812_v24 = vpack.c.bf16 %v155_v17, %v151_v16  ;;  %v820_v25 = vpack.c.bf16 %v157_v19, %v153_v18  ;;  %v814_v26 = vpack.c.bf16 %v154_v21, %v150_v20  ;;  %v822_v27 = vpack.c.bf16 %v156_v23, %v152_v22 }
  0xa4   :  { %813 = vmatprep.subr.bf16.mxu0 %v812_v24  ;;  %821 = vmatprep.subr.bf16.mxu1 %v820_v25  ;;  %v179_v63 = vpop.permute.xlu0 %178  ;;  %v184_v2 = vpop.permute.xlu1 %183 }
  0xa5   :  { %815 = vmatpush1.bf16.msra.mxu0 %v814_v26  ;;  %823 = vmatpush1.bf16.msra.mxu1 %v822_v27 }
  0xa8   :  { %791 = vmatmul.mubr.msk.f32.vlgmr.msra.gmra.mrb[0].mxu0 %vm186_vm0, %v158_v28  ;;  %795 = vmatmul.mubr.msk.f32.vlgmr.msra.gmra.mrb[0].mxu1 %vm186_vm0, %v158_v28 }
  0xa9   :  { %269 = vmatprep.mubr.f32.mxu0 %v893_v13  ;;  %358 = vmatprep.mubr.f32.mxu1 %v893_v13 }
  0xac   :  { %792 = vmatmul.mubr.msk.f32.gmra.mrb[2].mxu0 %vm186_vm0, %v159_v29  ;;  %796 = vmatmul.mubr.msk.f32.gmra.mrb[2].mxu1 %vm186_vm0, %v159_v29 }
  0xad   :  { %275 = vmatprep.mubr.f32.mxu0 %v893_v13  ;;  %364 = vmatprep.mubr.f32.mxu1 %v893_v13 }
  0xb0   :  { %793 = vmatmul.mubr.msk.f32.gmra.mrb[4].mxu0 %vm186_vm0, %v160_v30  ;;  %797 = vmatmul.mubr.msk.f32.gmra.mrb[4].mxu1 %vm186_vm0, %v160_v30  ;;  %v393_v30 = vld [vmem:[%s1278_s5] sm:$0x1]  ;;  %s895_s5 = smov 2  }
  0xb1   :  { %281 = vmatprep.mubr.f32.mxu0 %v893_v13  ;;  %370 = vmatprep.mubr.f32.mxu1 %v893_v13 }
  0xb4   :  { %794 = vmatmul.mubr.msk.f32.gmra.mrb[6].mxu0 %vm186_vm0, %v161_v31  ;;  %798 = vmatmul.mubr.msk.f32.gmra.mrb[6].mxu1 %vm186_vm0, %v161_v31  ;;  %v395_v31 = vstv %s799_s12 }
  0xb5   :  { %463 = vmatprep.mubr.f32.mxu0 %v893_v13  ;;  %534 = vmatprep.mubr.f32.mxu1 %v893_v13 }
 0x17b   :  { %v265_v32 = vpop.f32.mrb[0].mxu0  ;;  %v354_v33 = vpop.f32.mrb[0].mxu1 }
 0x17c   :  { %v267_v34 = vpop.f32.mrb[1].mxu0  ;;  %v356_v35 = vpop.f32.mrb[1].mxu1  ;;  %v266_v38 = vadd.f32 %v265_v32, %v169_v36  ;;  %v355_v39 = vadd.f32 %v354_v33, %v169_v36 }
 0x17d   :  { %v268_v40 = vadd.f32 %v267_v34, %v169_v36  ;;  %v357_v41 = vadd.f32 %v356_v35, %v169_v36 }
 0x17e   :  { %v377_v50 = vmax.f32 %v266_v38, 0.0  ;;  %v379_v13 = vmax.f32 %v355_v39, 0.0 }
 0x17f   :  { %v271_v42 = vpop.f32.mrb[2].mxu0  ;;  %v360_v43 = vpop.f32.mrb[2].mxu1  ;;  %v378_v53 = vmax.f32 %v268_v40, 0.0  ;;  %v380_v54 = vmax.f32 %v357_v41, 0.0 }
 0x180   :  { %v272_v44 = vadd.f32 %v271_v42, %v174_v37  ;;  %v361_v45 = vadd.f32 %v360_v43, %v174_v37  ;;  %v273_v46 = vpop.f32.mrb[3].mxu0  ;;  %v362_v47 = vpop.f32.mrb[3].mxu1 }
 0x181   :  { %v274_v48 = vadd.f32 %v273_v46, %v174_v37  ;;  %v363_v49 = vadd.f32 %v362_v47, %v174_v37 }
 0x182   :  { %v381_v51 = vmax.f32 %v272_v44, 0.0  ;;  %v383_v52 = vmax.f32 %v361_v45, 0.0  ;;  %v1051_v44 = vand.u32 127, %v66_v14 }
 0x183   :  { %v382_v55 = vmax.f32 %v274_v48, 0.0  ;;  %v384_v56 = vmax.f32 %v363_v49, 0.0  ;;  %v277_v57 = vpop.f32.mrb[4].mxu0  ;;  %v366_v58 = vpop.f32.mrb[4].mxu1 }
 0x184   :  { %v826_v59 = vpack.c.bf16 %v381_v51, %v377_v50  ;;  %v834_v60 = vpack.c.bf16 %v383_v52, %v379_v13  ;;  %v279_v61 = vpop.f32.mrb[5].mxu0  ;;  %v368_v62 = vpop.f32.mrb[5].mxu1  ;;  %v278_v3 = vadd.f32 %v277_v57, %v179_v63  ;;  %v367_v4 = vadd.f32 %v366_v58, %v179_v63 }
 0x185   :  { %v824_v0 = vpack.c.bf16 %v382_v55, %v378_v53  ;;  %v832_v1 = vpack.c.bf16 %v384_v56, %v380_v54  ;;  %v280_v5 = vadd.f32 %v279_v61, %v179_v63  ;;  %v369_v6 = vadd.f32 %v368_v62, %v179_v63 }
 0x186   :  { %v385_v18 = vmax.f32 %v278_v3, 0.0  ;;  %v387_v19 = vmax.f32 %v367_v4, 0.0  ;;  %v543_v47 = vadd.s32 128, %v1051_v44  ;;  %v544_v48 = vadd.s32 256, %v1051_v44 }
 0x187   :  { %v283_v7 = vpop.f32.mrb[6].mxu0  ;;  %v372_v8 = vpop.f32.mrb[6].mxu1  ;;  %825 = vmatprep.subr.bf16.mxu0 %v824_v0  ;;  %833 = vmatprep.subr.bf16.mxu1 %v832_v1  ;;  %v386_v22 = vmax.f32 %v280_v5, 0.0  ;;  %v388_v23 = vmax.f32 %v369_v6, 0.0  ;;  %v545_v49 = vadd.s32 384, %v1051_v44  ;;  %v551_v55 = vstv %s802_s18 }
 0x188   :  { %v284_v9 = vadd.f32 %v283_v7, %v184_v2  ;;  %v373_v10 = vadd.f32 %v372_v8, %v184_v2  ;;  %v285_v11 = vpop.f32.mrb[7].mxu0  ;;  %v374_v12 = vpop.f32.mrb[7].mxu1  ;;  %827 = vmatpush1.bf16.msra.mxu0 %v826_v59  ;;  %835 = vmatpush1.bf16.msra.mxu1 %v834_v60  ;;  %v1062_v51 = vand.u32 127, %v543_v47  ;;  %v1064_v52 = vand.u32 127, %v544_v48 }
 0x189   :  { %v286_v16 = vadd.f32 %v285_v11, %v184_v2  ;;  %v375_v17 = vadd.f32 %v374_v12, %v184_v2  ;;  %v1066_v53 = vand.u32 127, %v545_v49  ;;  %vm564_vm1 = vcmp.lt.s32.totalorder %v1051_v44, 3 }
 0x18a   :  { %v389_v20 = vmax.f32 %v284_v9, 0.0  ;;  %v391_v21 = vmax.f32 %v373_v10, 0.0  ;;  %vm570_vm2 = vcmp.ge.s32.totalorder %v1062_v51, 3  ;;  %v578_v57 = vstv %s573_s19 }
 0x18b   :  { %v390_v24 = vmax.f32 %v286_v16, 0.0  ;;  %v392_v25 = vmax.f32 %v375_v17, 0.0  ;;  %vm571_vm3 = vcmp.ge.s32.totalorder %v1064_v52, 3  ;;  %vm569_vm4 = vcmp.ge.s32.totalorder %v1051_v44, 3 }
 0x18c   :  { %v830_v26 = vpack.c.bf16 %v389_v20, %v385_v18  ;;  %v838_v27 = vpack.c.bf16 %v391_v21, %v387_v19  ;;  %vm572_vm5 = vcmp.ge.s32.totalorder %v1066_v53, 3  ;;  %vm595_vm6 = vcmp.lt.s32.totalorder %v1051_v44, 2 }
 0x18d   :  { %v828_v28 = vpack.c.bf16 %v390_v24, %v386_v22  ;;  %v836_v29 = vpack.c.bf16 %v392_v25, %v388_v23  ;;  %vm601_vm7 = vcmp.ge.s32.totalorder %v1062_v51, 2  ;;  %v1084_v60 = vstv %s803_s20 }
 0x18e   :  { %vm602_vm8 = vcmp.ge.s32.totalorder %v1064_v52, 2  ;;  %vm600_vm9 = vcmp.ge.s32.totalorder %v1051_v44, 2  ;;  %vm603_vm10 = vcmp.ge.s32.totalorder %v1066_v53, 2  ;;  %vm626_vm11 = vcmp.lt.s32.totalorder %v1051_v44, 1 }
 0x18f   :  { %829 = vmatprep.subr.bf16.mxu0 %v828_v28  ;;  %837 = vmatprep.subr.bf16.mxu1 %v836_v29  ;;  %vm632_vm12 = vcmp.ge.s32.totalorder %v1062_v51, 1  ;;  %v1115_v8 = vstv %s1070_s21  ;;  %vm631_vm13 = vcmp.ge.s32.totalorder %v1051_v44, 1  ;;  %vm633_vm14 = vcmp.ge.s32.totalorder %v1064_v52, 1 }
 0x190   :  { %831 = vmatpush1.bf16.msra.mxu0 %v830_v26  ;;  %839 = vmatpush1.bf16.msra.mxu1 %v838_v27  ;;  %vm634_vm15 = vcmp.ge.s32.totalorder %v1066_v53, 1  ;;  %v1131_v18 = vstv %s1077_s22  ;;  %v900_v19 = vmov 1966171168  }
 0x191   :  { %v1134_v20 = vunpack.c.l.s4 %v900_v19 }
 0x193   :  { %800 = vmatmul.mubr.msk.f32.vlgmr.msra.gmra.mrb[8].mxu0 %vm186_vm0, %v393_v30  ;;  %801 = vmatmul.mubr.msk.f32.vlgmr.msra.gmra.mrb[8].mxu1 %vm186_vm0, %v393_v30  ;;  %vm657_vm0 = vcmp.lt.s32.totalorder %v1051_v44, 127 }
 0x266   :  { %v465_v32 = vpop.f32.mrb[8].mxu0  ;;  %v536_v33 = vpop.f32.mrb[8].mxu1 }
 0x267   :  { %v1026_v34 = vadd.f32 %v465_v32, %v395_v31  ;;  %v467_v35 = vpop.f32.mrb[9].mxu0  ;;  %v538_v36 = vpop.f32.mrb[9].mxu1  ;;  %v537_v38 = vadd.f32 %v536_v33, %v395_v31  ;;  %v1161_v33 = vstv %s1103_s24 }
 0x268   :  { %v1028_v37 = vadd.f32 %v467_v35, %v395_v31  ;;  %v1032_v39 = vadd.f32 %v538_v36, %v395_v31  ;;  %v1151_v31 = vstv %s1095_s23 }
 0x269   :  { %556 = vrot.lane.b32.xlu0 %v1026_v34, %s894_s13  ;;  %v554_v58 = vmul.f32 %v551_v55, %v537_v38  ;;  %v552_v59 = vmul.f32 %v551_v55, %v1026_v34 }
 0x26a   :  { %558 = vrot.lane.b32.xlu1 %v1028_v37, %s894_s13  ;;  %v553_v62 = vmul.f32 %v551_v55, %v1028_v37  ;;  %v555_v1 = vmul.f32 %v551_v55, %v1032_v39 }
 0x26d   :  { %560 = vrot.lane.b32.xlu0 %v537_v38, %s894_s13 }
 0x26e   :  { %562 = vrot.lane.b32.xlu1 %v1032_v39, %s894_s13 }
 0x271   :  { %587 = vrot.lane.b32.xlu0 %v1026_v34, %s895_s5 }
 0x272   :  { %589 = vrot.lane.b32.xlu1 %v1028_v37, %s895_s5 }
 0x275   :  { %591 = vrot.lane.b32.xlu0 %v537_v38, %s895_s5 }
 0x276   :  { %593 = vrot.lane.b32.xlu1 %v1032_v39, %s895_s5 }
 0x279   :  { %618 = vrot.lane.b32.xlu0 %v1026_v34, %s896_s14 }
 0x27a   :  { %620 = vrot.lane.b32.xlu1 %v1028_v37, %s896_s14 }
 0x27d   :  { %622 = vrot.lane.b32.xlu0 %v537_v38, %s896_s14 }
 0x27e   :  { %624 = vrot.lane.b32.xlu1 %v1032_v39, %s896_s14 }
 0x281   :  { %649 = vrot.lane.b32.xlu0 %v1026_v34, %s897_s15 }
 0x282   :  { %651 = vrot.lane.b32.xlu1 %v1028_v37, %s897_s15 }
 0x285   :  { %653 = vrot.lane.b32.xlu0 %v537_v38, %s897_s15 }
 0x286   :  { %655 = vrot.lane.b32.xlu1 %v1032_v39, %s897_s15 }
 0x289   :  { %680 = vrot.lane.b32.xlu0 %v1026_v34, %s898_s16 }
 0x28a   :  { %682 = vrot.lane.b32.xlu1 %v1028_v37, %s898_s16 }
 0x28d   :  { %684 = vrot.lane.b32.xlu0 %v537_v38, %s898_s16 }
 0x28e   :  { %686 = vrot.lane.b32.xlu1 %v1032_v39, %s898_s16 }
 0x291   :  { %711 = vrot.lane.b32.xlu0 %v1026_v34, %s899_s17  ;;  %v750_v34 = vunpack.c.0.s8 %v1134_v20 }
 0x292   :  { %713 = vrot.lane.b32.xlu1 %v1028_v37, %s899_s17 }
 0x295   :  { %715 = vrot.lane.b32.xlu0 %v537_v38, %s899_s17 }
 0x296   :  { %717 = vrot.lane.b32.xlu1 %v1032_v39, %s899_s17 }
 0x2db   :  { %v557_v40 = vpop.permute.xlu0 %556 }
 0x2dc   :  { %v559_v41 = vpop.permute.xlu1 %558 }
 0x2dd   :  { %v567_v63 = vsel %vm564_vm1, %v557_v40, %v559_v41 }
 0x2de   :  { %v575_v6 = vsel %vm570_vm2, %v567_v63, 0.0  ;;  %vm664_vm2 = vcmp.lt.s32.totalorder %v1064_v52, 127 }
 0x2df   :  { %v561_v42 = vpop.permute.xlu0 %560  ;;  %v580_v21 = vmul.f32 %v578_v57, %v575_v6 }
 0x2e0   :  { %v563_v43 = vpop.permute.xlu1 %562  ;;  %v566_v0 = vsel %vm564_vm1, %v559_v41, %v561_v42 }
 0x2e1   :  { %v565_v3 = vsel %vm564_vm1, %v561_v42, %v563_v43  ;;  %v568_v4 = vsel %vm564_vm1, %v563_v43, %v557_v40  ;;  %v576_v7 = vsel %vm571_vm3, %v566_v0, 0.0  ;;  %vm663_vm1 = vcmp.lt.s32.totalorder %v1062_v51, 127 }
 0x2e2   :  { %v574_v10 = vsel %vm569_vm4, %v568_v4, 0.0  ;;  %v577_v11 = vsel %vm572_vm5, %v565_v3, 0.0  ;;  %v581_v22 = vmul.f32 %v578_v57, %v576_v7  ;;  %vm665_vm3 = vcmp.lt.s32.totalorder %v1066_v53, 127 }
 0x2e3   :  { %v1053_v45 = vpop.permute.xlu0 %587  ;;  %vm688_vm4 = vcmp.lt.s32.totalorder %v1051_v44, 126  ;;  %v579_v23 = vmul.f32 %v578_v57, %v574_v10  ;;  %v582_v24 = vmul.f32 %v578_v57, %v577_v11  ;;  %vm694_vm5 = vcmp.lt.s32.totalorder %v1062_v51, 126 }
 0x2e4   :  { %v590_v46 = vpop.permute.xlu1 %589  ;;  %v584_v35 = vadd.f32 %v580_v21, %v553_v62  ;;  %v585_v39 = vadd.f32 %v581_v22, %v554_v58 }
 0x2e5   :  { %v598_v5 = vsel %vm595_vm6, %v1053_v45, %v590_v46  ;;  %v583_v40 = vadd.f32 %v579_v23, %v552_v59  ;;  %v586_v41 = vadd.f32 %v582_v24, %v555_v1 }
 0x2e6   :  { %v606_v17 = vsel %vm601_vm7, %v598_v5, 0.0  ;;  %vm695_vm7 = vcmp.lt.s32.totalorder %v1064_v52, 126 }
 0x2e7   :  { %v1058_v50 = vpop.permute.xlu0 %591  ;;  %v611_v28 = vmul.f32 %v1084_v60, %v606_v17 }
 0x2e8   :  { %v1060_v13 = vpop.permute.xlu1 %593  ;;  %v597_v12 = vsel %vm595_vm6, %v590_v46, %v1058_v50 }
 0x2e9   :  { %v607_v25 = vsel %vm602_vm8, %v597_v12, 0.0  ;;  %v599_v26 = vsel %vm595_vm6, %v1060_v13, %v1053_v45  ;;  %v596_v29 = vsel %vm595_vm6, %v1058_v50, %v1060_v13  ;;  %vm696_vm8 = vcmp.lt.s32.totalorder %v1066_v53, 126 }
 0x2ea   :  { %v612_v36 = vmul.f32 %v1084_v60, %v607_v25  ;;  %v605_v37 = vsel %vm600_vm9, %v599_v26, 0.0  ;;  %vm719_vm6 = vcmp.lt.s32.totalorder %v1051_v44, 125  ;;  %v608_v42 = vsel %vm603_vm10, %v596_v29, 0.0 }
 0x2eb   :  { %v1068_v54 = vpop.permute.xlu0 %618  ;;  %v615_v45 = vadd.f32 %v611_v28, %v584_v35  ;;  %v610_v50 = vmul.f32 %v1084_v60, %v605_v37  ;;  %v613_v58 = vmul.f32 %v1084_v60, %v608_v42  ;;  %vm725_vm9 = vcmp.lt.s32.totalorder %v1062_v51, 125 }
 0x2ec   :  { %v1072_v56 = vpop.permute.xlu1 %620  ;;  %v616_v57 = vadd.f32 %v612_v36, %v585_v39  ;;  %vm726_vm10 = vcmp.lt.s32.totalorder %v1064_v52, 125  ;;  %v753_v44 = vsub.s32 %v750_v34, %v984_v15 }
 0x2ed   :  { %v629_v32 = vsel %vm626_vm11, %v1068_v54, %v1072_v56  ;;  %v614_v11 = vadd.f32 %v610_v50, %v583_v40  ;;  %v617_v19 = vadd.f32 %v613_v58, %v586_v41 }
 0x2ee   :  { %v637_v46 = vsel %vm632_vm12, %v629_v32, 0.0  ;;  %vm773_vm12 = vcmp.lt.s32.totalorder %v66_v14, 512 }
 0x2ef   :  { %v1087_v61 = vpop.permute.xlu0 %622 }
 0x2f0   :  { %v625_v2 = vpop.permute.xlu1 %624  ;;  %v628_v47 = vsel %vm626_vm11, %v1072_v56, %v1087_v61 }
 0x2f1   :  { %v630_v38 = vsel %vm626_vm11, %v625_v2, %v1068_v54  ;;  %v627_v48 = vsel %vm626_vm11, %v1087_v61, %v625_v2  ;;  %v642_v61 = vmul.f32 %v1115_v8, %v637_v46  ;;  %v638_v62 = vsel %vm633_vm14, %v628_v47, 0.0 }
 0x2f2   :  { %v636_v13 = vsel %vm631_vm13, %v630_v38, 0.0  ;;  %v639_v63 = vsel %vm634_vm15, %v627_v48, 0.0  ;;  %vm727_vm11 = vcmp.lt.s32.totalorder %v1066_v53, 125  ;;  %v643_v12 = vmul.f32 %v1115_v8, %v638_v62 }
 0x2f3   :  { %v650_v9 = vpop.permute.xlu0 %649  ;;  %v641_v1 = vmul.f32 %v1115_v8, %v636_v13  ;;  %v646_v29 = vadd.f32 %v642_v61, %v615_v45 }
 0x2f4   :  { %v652_v16 = vpop.permute.xlu1 %651  ;;  %v647_v36 = vadd.f32 %v643_v12, %v616_v57 }
 0x2f5   :  { %v660_v54 = vsel %vm657_vm0, %v650_v9, %v652_v16 }
 0x2f6   :  { %v667_v2 = vsel %vm657_vm0, %v660_v54, 0.0 }
 0x2f7   :  { %v654_v27 = vpop.permute.xlu0 %653  ;;  %v672_v21 = vmul.f32 %v1131_v18, %v667_v2 }
 0x2f8   :  { %v656_v30 = vpop.permute.xlu1 %655  ;;  %v659_v55 = vsel %vm657_vm0, %v652_v16, %v654_v27  ;;  %v644_v16 = vmul.f32 %v1115_v8, %v639_v63 }
 0x2f9   :  { %v658_v56 = vsel %vm657_vm0, %v654_v27, %v656_v30  ;;  %v661_v59 = vsel %vm657_vm0, %v656_v30, %v650_v9  ;;  %v668_v3 = vsel %vm663_vm1, %v659_v55, 0.0  ;;  %v645_v30 = vadd.f32 %v641_v1, %v614_v11 }
 0x2fa   :  { %v669_v6 = vsel %vm664_vm2, %v658_v56, 0.0  ;;  %v670_v7 = vsel %vm665_vm3, %v661_v59, 0.0  ;;  %v673_v22 = vmul.f32 %v1131_v18, %v668_v3  ;;  %v648_v37 = vadd.f32 %v644_v16, %v617_v19 }
 0x2fb   :  { %v681_v43 = vpop.permute.xlu0 %680  ;;  %v674_v25 = vmul.f32 %v1131_v18, %v669_v6  ;;  %v675_v26 = vmul.f32 %v1131_v18, %v670_v7  ;;  %v676_v39 = vadd.f32 %v672_v21, %v645_v30 }
 0x2fc   :  { %v683_v49 = vpop.permute.xlu1 %682  ;;  %v677_v40 = vadd.f32 %v673_v22, %v646_v29 }
 0x2fd   :  { %v691_v0 = vsel %vm688_vm4, %v681_v43, %v683_v49  ;;  %v678_v45 = vadd.f32 %v674_v25, %v647_v36  ;;  %v679_v46 = vadd.f32 %v675_v26, %v648_v37 }
 0x2fe   :  { %v698_v17 = vsel %vm688_vm4, %v691_v0, 0.0 }
 0x2ff   :  { %v685_v60 = vpop.permute.xlu0 %684  ;;  %v703_v32 = vmul.f32 %v1151_v31, %v698_v17 }
 0x300   :  { %v690_v4 = vsel %vm688_vm4, %v683_v49, %v685_v60  ;;  %v687_v5 = vpop.permute.xlu1 %686 }
 0x301   :  { %v689_v9 = vsel %vm688_vm4, %v685_v60, %v687_v5  ;;  %v692_v10 = vsel %vm688_vm4, %v687_v5, %v681_v43  ;;  %v699_v23 = vsel %vm694_vm5, %v690_v4, 0.0  ;;  %v707_v50 = vadd.f32 %v703_v32, %v676_v39 }
 0x302   :  { %v700_v27 = vsel %vm695_vm7, %v689_v9, 0.0  ;;  %v701_v8 = vsel %vm696_vm8, %v692_v10, 0.0  ;;  %v704_v38 = vmul.f32 %v1151_v31, %v699_v23 }
 0x303   :  { %v712_v24 = vpop.permute.xlu0 %711  ;;  %v705_v41 = vmul.f32 %v1151_v31, %v700_v27  ;;  %v706_v42 = vmul.f32 %v1151_v31, %v701_v8 }
 0x304   :  { %v714_v28 = vpop.permute.xlu1 %713  ;;  %v708_v31 = vadd.f32 %v704_v38, %v677_v40 }
 0x305   :  { %v722_v35 = vsel %vm719_vm6, %v712_v24, %v714_v28  ;;  %v709_v59 = vadd.f32 %v705_v41, %v678_v45  ;;  %v710_v61 = vadd.f32 %v706_v42, %v679_v46 }
 0x306   :  { %v729_v18 = vsel %vm719_vm6, %v722_v35, 0.0 }
 0x307   :  { %v716_v43 = vpop.permute.xlu0 %715  ;;  %v734_v47 = vmul.f32 %v1161_v33, %v729_v18 }
 0x308   :  { %v721_v48 = vsel %vm719_vm6, %v714_v28, %v716_v43  ;;  %v718_v49 = vpop.permute.xlu1 %717 }
 0x309   :  { %v730_v13 = vsel %vm725_vm9, %v721_v48, 0.0  ;;  %v720_v54 = vsel %vm719_vm6, %v716_v43, %v718_v49  ;;  %v723_v55 = vsel %vm719_vm6, %v718_v49, %v712_v24  ;;  %v738_v63 = vadd.f32 %v734_v47, %v707_v50 }
 0x30a   :  { %v735_v57 = vmul.f32 %v1161_v33, %v730_v13  ;;  %v731_v58 = vsel %vm726_vm10, %v720_v54, 0.0  ;;  %v732_v56 = vsel %vm727_vm11, %v723_v55, 0.0 }
 0x30b   :  { %v736_v51 = vmul.f32 %v1161_v33, %v731_v58  ;;  %v737_v62 = vmul.f32 %v1161_v33, %v732_v56 }
 0x30c   :  { %v739_v0 = vadd.f32 %v735_v57, %v708_v31 }
 0x30d   :  { %v740_v60 = vadd.f32 %v736_v51, %v709_v59  ;;  %v741_v1 = vadd.f32 %v737_v62, %v710_v61 }
 0x30e   :  { %v746_v2 = vcombine.low %v738_v63, %v739_v0 }
 0x30f   :  { %v747_v52 = vcombine.low %v740_v60, %v741_v1 }
 0x310   :  { %v754_v3 = vrot.slane %v746_v2, %v753_v44 }
 0x311   :  { %v761_v4 = vrot.slane %v747_v52, %v753_v44 }
 0x313   :  { %v762_v53 = vcombine.low %v754_v3, %v761_v4 }
 0x315   :  { %v769_v5 = vrot.slane %v762_v53, %v753_v44 }
 0x317   :  { %775 = vst.msk [vmem:[#allocation5] sm:$0xf] %vm773_vm12, %v769_v5 }
 0x318   :  { %876 = shalt.err (!%p873_p9)
}
 0x319   :  { %s877_s4 = scalar_lea.hbm %s1280_s7, 64 }
 0x31a   :  { %p878_p10 = scmp.ne.s32.totalorder %s1280_s7, %s877_s4  ;;  %p881_p11 = scmp.lt.u32.totalorder %s877_s4, %s1280_s7 }
 0x31c   :  { %p883_p12 = pnand %p881_p11, %p878_p10 }
 0x31e   :  { %886 = shalt.err (!%p883_p12)
}
 0x31f   :  { %785 = dma.vmem_to_hbm [thread:$0]  %s783_s25, 64, %s1280_s7, [#allocation3]  }
 0x320   :  { %889 = dma.done.wait [#allocation3], 64  }
 0x321   :  { %890 = vsyncadd [#allocation3], 4294967232 }
 0x322   :  { %789 = vsyncpa [#allocation3], 1 }
 0x323   :  { %790 = vsyncpa [#allocation4], 1 }

</bundles_post_ra>
